<compile_context>
chip_gen: v6e
topology: v6e:2x2x1
jax: 0.10.0
libtpu: 0.0.40
codegen_flags: <defaults>
</compile_context>

<pallas_src>
import functools

import jax
import jax.numpy as jnp
from jax.experimental import pallas as pl
from jax.experimental.pallas import tpu as pltpu

LANE = 128


def _round_up(n, m=LANE):
    return ((n + m - 1) // m) * m


def _choose_bb(B, max_bb=8):
    """Largest batch-block <= max_bb that divides B while keeping >=2 grid steps."""
    best = 1
    for bb in range(1, min(B, max_bb) + 1):
        if B % bb == 0 and (B // bb) >= 2:
            best = bb
    return best


# --------------------------------------------------------------------------
# Fused backbone + head kernel (one grid step = BB batch elements)
# --------------------------------------------------------------------------
def fused_network_kernel(lbl_ref,      # SMEM (B,) int32 (scalar prefetch)
                         lhs_ref,      # (BB, HW, KP) bf16   im2col patches
                         cw_ref,       # (KP, CP)     bf16   conv weight matrix
                         cb_ref,       # (1, CP)      f32
                         fcw_ref,      # (CP, FP)     bf16
                         fcb_ref,      # (1, FP)      f32
                         hw_ref,       # (FP, CLP)    f32    pre-normalized, scale-folded
                         logits_ref,   # (1, BB, CLP) f32  out
                         fns_ref,      # (1, BB, LANE) f32 out (||f||^2 per sample)
                         *, BB, scale, margin):
    b0 = pl.program_id(0) * BB
    HW = lhs_ref.shape[1]
    KP = lhs_ref.shape[2]
    CP = cw_ref.shape[1]
    CLP = hw_ref.shape[1]

    # ---- conv 3x3 (pad=1) as a single (BB*HW, KP) x (KP, CP) matmul ----
    lhs = lhs_ref[...].reshape(BB * HW, KP)
    conv = jnp.dot(lhs, cw_ref[...], preferred_element_type=jnp.float32)
    conv = jnp.maximum(conv + cb_ref[...], 0.0)                # (BB*HW, CP)

    # ---- global average pool: per-sample segment reduce (XLU, lane-dense) ----
    pooled = jnp.sum(conv.reshape(BB, HW, CP), axis=1) * (1.0 / HW)   # (BB, CP)

    # ---- backbone fc (M = BB) ----
    feat = jnp.dot(pooled.astype(jnp.bfloat16), fcw_ref[...],
                   preferred_element_type=jnp.float32) + fcb_ref[...]  # (BB, FP)

    # ---- head: cosine-margin classifier (f32) ----
    f_norm_sq = jnp.sum(feat * feat, axis=-1, keepdims=True)           # (BB, 1)
    f_n = feat * jax.lax.rsqrt(f_norm_sq + 1e-12)
    # hw_ref is already column-normalized and multiplied by `scale` in __init__
    cos_scaled = jnp.dot(f_n, hw_ref[...],
                         preferred_element_type=jnp.float32)           # (BB, CLP)

    # additive margin at the label position: logits = scale*cos - scale*margin*onehot
    row_ids = jax.lax.broadcasted_iota(jnp.int32, (BB, CLP), 0)
    cls_ids = jax.lax.broadcasted_iota(jnp.int32, (BB, CLP), 1)
    onehot = jnp.zeros((BB, CLP), jnp.float32)
    for i in range(BB):                                   # static, BB <= 8
        onehot = onehot + jnp.where(
            (row_ids == i) & (cls_ids == lbl_ref[b0 + i]), 1.0, 0.0)

    logits_ref[...] = (cos_scaled - (scale * margin) * onehot).reshape(1, BB, CLP)
    # per-sample squared feature norm; batch-mean (reg loss) done in the wrapper
    fns_ref[...] = jnp.broadcast_to(f_norm_sq.reshape(1, BB, 1), fns_ref.shape)


def network_forward(labels, lhs, conv_w, conv_b, fc_w, fc_b, head_w,
                    *, scale, margin):
    B, HW, KP = lhs.shape
    CP = conv_w.shape[1]
    FP = fc_w.shape[1]
    CLP = head_w.shape[1]

    BB = _choose_bb(B)
    G = B // BB

    kernel = functools.partial(fused_network_kernel, BB=BB,
                               scale=scale, margin=margin)
    grid_spec = pltpu.PrefetchScalarGridSpec(
        num_scalar_prefetch=1,
        grid=(G,),
        in_specs=[
            pl.BlockSpec((BB, HW, KP), lambda i, lbl: (i, 0, 0)),
            pl.BlockSpec((KP, CP), lambda i, lbl: (0, 0)),
            pl.BlockSpec((1, CP), lambda i, lbl: (0, 0)),
            pl.BlockSpec((CP, FP), lambda i, lbl: (0, 0)),
            pl.BlockSpec((1, FP), lambda i, lbl: (0, 0)),
            pl.BlockSpec((FP, CLP), lambda i, lbl: (0, 0)),
        ],
        out_specs=(
            pl.BlockSpec((1, BB, CLP), lambda i, lbl: (i, 0, 0)),
            pl.BlockSpec((1, BB, LANE), lambda i, lbl: (i, 0, 0)),
        ),
    )
    return pl.pallas_call(
        kernel,
        grid_spec=grid_spec,
        out_shape=(
            jax.ShapeDtypeStruct((G, BB, CLP), jnp.float32),
            jax.ShapeDtypeStruct((G, BB, LANE), jnp.float32),
        ),
        compiler_params=pltpu.CompilerParams(
            dimension_semantics=("parallel",),   # >=2 grid steps: both v7x TCs
            vmem_limit_bytes=8 * 1024 * 1024,    # ~3x working set, safe v5e..v7x
        ),
    )(labels, lhs, conv_w, conv_b, fc_w, fc_b, head_w)


# --------------------------------------------------------------------------
# Jitted glue: NCHW -> lane-dense im2col LHS (layout plumbing), one fused
# kernel call, un-pad.
# --------------------------------------------------------------------------
@functools.partial(jax.jit,
                   static_argnames=("scale", "margin", "reg_coeff",
                                    "num_classes"))
def _network_apply(labels, x_nchw, conv_w, conv_b, fc_w, fc_b, head_w,
                   *, scale, margin, reg_coeff, num_classes):
    B, Cin, H, W = x_nchw.shape
    HW = H * W
    K = 9 * Cin
    KP = conv_w.shape[0]
    CLP = head_w.shape[1]

    # im2col in the wrapper: (B, HW, 9*Cin), zero-padded along K to KP, bf16.
    x = jnp.transpose(x_nchw, (0, 2, 3, 1))                  # NHWC
    x_pad = jnp.pad(x, ((0, 0), (1, 1), (1, 1), (0, 0)))     # spatial pad=1
    taps = [x_pad[:, di:di + H, dj:dj + W, :]
            for di in range(3) for dj in range(3)]
    lhs = jnp.concatenate(taps, axis=-1).reshape(B, HW, K)
    lhs = jnp.pad(lhs, ((0, 0), (0, 0), (0, KP - K))).astype(jnp.bfloat16)

    labels_i32 = labels.astype(jnp.int32).reshape(B)

    logits_p, fns = network_forward(labels_i32, lhs, conv_w, conv_b,
                                    fc_w, fc_b, head_w,
                                    scale=scale, margin=margin)
    outputs = logits_p.reshape(B, CLP)[:, :num_classes]
    reg_loss = reg_coeff * jnp.mean(fns.reshape(B, LANE)[:, 0])
    return outputs, reg_loss


# --------------------------------------------------------------------------
# The Network module (backbone + head), parameters built deterministically
# --------------------------------------------------------------------------
class NetworkPallas:
    def __init__(self, key, in_ch=4, conv_ch=8, feat_dim=32, num_classes=10):
        ks = jax.random.split(key, 5)
        self.in_ch, self.conv_ch = in_ch, conv_ch
        self.feat_dim, self.num_classes = feat_dim, num_classes
        self.scale, self.margin, self.reg_coeff = 30.0, 0.35, 0.01
        self.features_saved = []   # parity with the torch module

        conv_w = 0.1 * jax.random.normal(ks[0], (conv_ch, in_ch, 3, 3),
                                         jnp.float32)        # OIHW
        conv_b = 0.1 * jax.random.normal(ks[1], (conv_ch,), jnp.float32)
        fc_w = 0.1 * jax.random.normal(ks[2], (conv_ch, feat_dim), jnp.float32)
        fc_b = 0.1 * jax.random.normal(ks[3], (feat_dim,), jnp.float32)
        head_w = 0.1 * jax.random.normal(ks[4], (feat_dim, num_classes),
                                         jnp.float32)

        # Lane-dense (128-padded) parameter layouts; zero padding keeps math exact.
        K = 9 * in_ch
        KP, CP = _round_up(K), _round_up(conv_ch)
        FP, CLP = _round_up(feat_dim), _round_up(num_classes)
        self.KP, self.CP, self.FP, self.CLP = KP, CP, FP, CLP

        # (O,I,3,3) -> (3,3,I,O) -> (9*I, O); matches the wrapper's im2col order.
        w_mat = jnp.transpose(conv_w, (2, 3, 1, 0)).reshape(K, conv_ch)
        self.conv_w_p = jnp.pad(
            w_mat, ((0, KP - K), (0, CP - conv_ch))).astype(jnp.bfloat16)
        self.conv_b_p = jnp.pad(conv_b, (0, CP - conv_ch)).reshape(1, CP)
        self.fc_w_p = jnp.pad(
            fc_w, ((0, CP - conv_ch), (0, FP - feat_dim))).astype(jnp.bfloat16)
        self.fc_b_p = jnp.pad(fc_b, (0, FP - feat_dim)).reshape(1, FP)

        # Hoisted head-weight normalization (+ scale folded in), f32, zero-padded.
        w_norm = head_w * jax.lax.rsqrt(
            jnp.sum(head_w * head_w, axis=0, keepdims=True) + 1e-12)
        self.head_w_p = jnp.pad(
            self.scale * w_norm,
            ((0, FP - feat_dim), (0, CLP - num_classes)))     # f32

    def reset(self):
        self.features_saved = []

    def __call__(self, inputs, labels):
        outputs, reg_loss = _network_apply(
            labels, inputs, self.conv_w_p, self.conv_b_p,
            self.fc_w_p, self.fc_b_p, self.head_w_p,
            scale=self.scale, margin=self.margin,
            reg_coeff=self.reg_coeff, num_classes=self.num_classes)
        # TODO(synk): feature-saving hooks (self.features_saved) are commented
        # out in the original module's forward; not replicated here.
        return outputs, reg_loss


if __name__ == "__main__":
    key = jax.random.PRNGKey(0)
    k_in, k_lbl, k_net = jax.random.split(key, 3)
    x = jax.random.normal(k_in, (2, 4, 16, 16), jnp.float32)     # NCHW
    labels = jax.random.randint(k_lbl, (2,), 0, 10)
    net = NetworkPallas(k_net, in_ch=4, conv_ch=8, feat_dim=32, num_classes=10)
    outputs, reg_loss = net(x, labels)
    jax.block_until_ready((outputs, reg_loss))
    assert outputs.shape == (2, 10)
    assert reg_loss.shape == ()
    print("KERNEL_OK")
</pallas_src>

<mosaic_0001>
module attributes {stable_mosaic.version = 11 : i64} {
  func.func @fused_network_kernel(%arg0: i32, %arg1: memref<2xi32, #tpu.memory_space<smem>>, %arg2: memref<1x256x128xbf16, #tpu.memory_space<vmem>>, %arg3: memref<128x128xbf16, #tpu.memory_space<vmem>>, %arg4: memref<1x128xf32, #tpu.memory_space<vmem>>, %arg5: memref<128x128xbf16, #tpu.memory_space<vmem>>, %arg6: memref<1x128xf32, #tpu.memory_space<vmem>>, %arg7: memref<128x128xf32, #tpu.memory_space<vmem>>, %arg8: memref<1x1x128xf32, #tpu.memory_space<vmem>>, %arg9: memref<1x1x128xf32, #tpu.memory_space<vmem>>) attributes {dimension_semantics = [#tpu.dimension_semantics<parallel>], iteration_bounds = array<i64: 2>, scalar_prefetch = 1 : i64, scratch_operands = 0 : i64, tpu.core_type = #tpu.core_type<tc>, window_params = [{transform_indices = @transform_0, window_bounds = array<i64: 1, 256, 128>}, {pipeline_mode = #tpu.pipeline_mode<synchronous>, transform_indices = @transform_1, window_bounds = array<i64: 128, 128>}, {pipeline_mode = #tpu.pipeline_mode<synchronous>, transform_indices = @transform_2, window_bounds = array<i64: 1, 128>}, {pipeline_mode = #tpu.pipeline_mode<synchronous>, transform_indices = @transform_3, window_bounds = array<i64: 128, 128>}, {pipeline_mode = #tpu.pipeline_mode<synchronous>, transform_indices = @transform_4, window_bounds = array<i64: 1, 128>}, {pipeline_mode = #tpu.pipeline_mode<synchronous>, transform_indices = @transform_5, window_bounds = array<i64: 128, 128>}, {transform_indices = @transform_6, window_bounds = array<i64: 1, 1, 128>}, {transform_indices = @transform_7, window_bounds = array<i64: 1, 1, 128>}]} {
    %c1_i32 = arith.constant 1 : i32
    %0 = arith.muli %arg0, %c1_i32 : i32
    %c0 = arith.constant 0 : index
    %c0_0 = arith.constant 0 : index
    %c0_1 = arith.constant 0 : index
    %1 = vector.load %arg2[%c0, %c0_0, %c0_1] : memref<1x256x128xbf16, #tpu.memory_space<vmem>>, vector<1x256x128xbf16>
    %2 = vector.shape_cast %1 : vector<1x256x128xbf16> to vector<256x128xbf16>
    %c0_2 = arith.constant 0 : index
    %c0_3 = arith.constant 0 : index
    %3 = vector.load %arg3[%c0_2, %c0_3] : memref<128x128xbf16, #tpu.memory_space<vmem>>, vector<128x128xbf16>
    %cst = arith.constant dense<0.000000e+00> : vector<256x128xf32>
    %4 = tpu.matmul %2, %3, %cst {dimension_numbers = #tpu.dot_dimension_numbers<[1], [0], [0], [1], [0, 0, 1, 1], [], []>} : vector<256x128xbf16>, vector<128x128xbf16>, vector<256x128xf32> -> vector<256x128xf32>
    %c0_4 = arith.constant 0 : index
    %c0_5 = arith.constant 0 : index
    %5 = vector.load %arg4[%c0_4, %c0_5] : memref<1x128xf32, #tpu.memory_space<vmem>>, vector<1x128xf32>
    %6 = vector.broadcast %5 : vector<1x128xf32> to vector<256x128xf32>
    %7 = arith.addf %4, %6 : vector<256x128xf32>
    %cst_6 = arith.constant 0.000000e+00 : f32
    %8 = vector.broadcast %cst_6 : f32 to vector<256x128xf32>
    %9 = arith.maximumf %7, %8 : vector<256x128xf32>
    %10 = vector.shape_cast %9 : vector<256x128xf32> to vector<1x256x128xf32>
    %cst_7 = arith.constant dense<0.000000e+00> : vector<1x128xf32>
    %11 = vector.multi_reduction <add>, %10, %cst_7 [1] : vector<1x256x128xf32> to vector<1x128xf32>
    %cst_8 = arith.constant 3.906250e-03 : f32
    %12 = vector.broadcast %cst_8 : f32 to vector<1x128xf32>
    %13 = arith.mulf %11, %12 : vector<1x128xf32>
    %14 = arith.truncf %13 : vector<1x128xf32> to vector<1x128xbf16>
    %c0_9 = arith.constant 0 : index
    %c0_10 = arith.constant 0 : index
    %15 = vector.load %arg5[%c0_9, %c0_10] : memref<128x128xbf16, #tpu.memory_space<vmem>>, vector<128x128xbf16>
    %cst_11 = arith.constant dense<0.000000e+00> : vector<1x128xf32>
    %16 = tpu.matmul %14, %15, %cst_11 {dimension_numbers = #tpu.dot_dimension_numbers<[1], [0], [0], [1], [0, 0, 1, 1], [], []>} : vector<1x128xbf16>, vector<128x128xbf16>, vector<1x128xf32> -> vector<1x128xf32>
    %c0_12 = arith.constant 0 : index
    %c0_13 = arith.constant 0 : index
    %17 = vector.load %arg6[%c0_12, %c0_13] : memref<1x128xf32, #tpu.memory_space<vmem>>, vector<1x128xf32>
    %18 = arith.addf %16, %17 : vector<1x128xf32>
    %19 = arith.mulf %18, %18 : vector<1x128xf32>
    %cst_14 = arith.constant dense<0.000000e+00> : vector<1xf32>
    %20 = vector.multi_reduction <add>, %19, %cst_14 [1] : vector<1x128xf32> to vector<1xf32>
    %21 = vector.shape_cast %20 : vector<1xf32> to vector<1x1xf32>
    %cst_15 = arith.constant 9.99999996E-13 : f32
    %22 = vector.broadcast %cst_15 : f32 to vector<1x1xf32>
    %23 = arith.addf %21, %22 : vector<1x1xf32>
    %24 = math.rsqrt %23 : vector<1x1xf32>
    %25 = vector.broadcast %24 : vector<1x1xf32> to vector<1x128xf32>
    %26 = arith.mulf %18, %25 : vector<1x128xf32>
    %c0_16 = arith.constant 0 : index
    %c0_17 = arith.constant 0 : index
    %27 = vector.load %arg7[%c0_16, %c0_17] : memref<128x128xf32, #tpu.memory_space<vmem>>, vector<128x128xf32>
    %cst_18 = arith.constant dense<0.000000e+00> : vector<1x128xf32>
    %28 = tpu.matmul %26, %27, %cst_18 {dimension_numbers = #tpu.dot_dimension_numbers<[1], [0], [0], [1], [0, 0, 1, 1], [], []>} : vector<1x128xf32>, vector<128x128xf32>, vector<1x128xf32> -> vector<1x128xf32>
    %29 = tpu.iota {dimensions = array<i32: 0>} : vector<1x128xi32>
    %30 = tpu.iota {dimensions = array<i32: 1>} : vector<1x128xi32>
    %cst_19 = arith.constant 0.000000e+00 : f32
    %31 = vector.broadcast %cst_19 : f32 to vector<1x128xf32>
    %c0_i32 = arith.constant 0 : i32
    %32 = vector.broadcast %c0_i32 : i32 to vector<1x128xi32>
    %33 = arith.cmpi eq, %29, %32 : vector<1x128xi32>
    %c0_i32_20 = arith.constant 0 : i32
    %34 = arith.addi %0, %c0_i32_20 : i32
    %35 = arith.index_cast %34 : i32 to index
    %36 = memref.load %arg1[%35] : memref<2xi32, #tpu.memory_space<smem>>
    %37 = vector.broadcast %36 : i32 to vector<1x128xi32>
    %38 = arith.cmpi eq, %30, %37 : vector<1x128xi32>
    %39 = arith.andi %33, %38 : vector<1x128xi1>
    %cst_21 = arith.constant 1.000000e+00 : f32
    %cst_22 = arith.constant 0.000000e+00 : f32
    %40 = vector.broadcast %cst_21 : f32 to vector<1x128xf32>
    %41 = vector.broadcast %cst_22 : f32 to vector<1x128xf32>
    %42 = arith.select %39, %40, %41 : vector<1x128xi1>, vector<1x128xf32>
    %43 = arith.addf %31, %42 : vector<1x128xf32>
    %cst_23 = arith.constant 1.050000e+01 : f32
    %44 = vector.broadcast %cst_23 : f32 to vector<1x128xf32>
    %45 = arith.mulf %44, %43 : vector<1x128xf32>
    %46 = arith.subf %28, %45 : vector<1x128xf32>
    %47 = vector.shape_cast %46 : vector<1x128xf32> to vector<1x1x128xf32>
    %c0_24 = arith.constant 0 : index
    %c0_25 = arith.constant 0 : index
    %c0_26 = arith.constant 0 : index
    %48 = vector.load %arg8[%c0_24, %c0_25, %c0_26] : memref<1x1x128xf32, #tpu.memory_space<vmem>>, vector<1x1x128xf32>
    tpu.vector_store %arg8[%c0_24, %c0_25, %c0_26], %47 {strides = array<i32>} : memref<1x1x128xf32, #tpu.memory_space<vmem>>, vector<1x1x128xf32>,
    %49 = vector.shape_cast %21 : vector<1x1xf32> to vector<1x1x1xf32>
    %50 = vector.shape_cast %49 : vector<1x1x1xf32> to vector<1x1x1xf32>
    %51 = vector.broadcast %50 : vector<1x1x1xf32> to vector<1x1x128xf32>
    %c0_27 = arith.constant 0 : index
    %c0_28 = arith.constant 0 : index
    %c0_29 = arith.constant 0 : index
    %52 = vector.load %arg9[%c0_27, %c0_28, %c0_29] : memref<1x1x128xf32, #tpu.memory_space<vmem>>, vector<1x1x128xf32>
    tpu.vector_store %arg9[%c0_27, %c0_28, %c0_29], %51 {strides = array<i32>} : memref<1x1x128xf32, #tpu.memory_space<vmem>>, vector<1x1x128xf32>,
    return
  }
  func.func @transform_0(%arg0: i32, %arg1: memref<2xi32, #tpu.memory_space<smem>>) -> (i32, i32, i32) {
    %c0_i32 = arith.constant 0 : i32
    %c0_i32_0 = arith.constant 0 : i32
    %c0_i32_1 = arith.constant 0 : i32
    return %arg0, %c0_i32, %c0_i32_0 : i32, i32, i32
  }
  func.func @transform_1(%arg0: i32, %arg1: memref<2xi32, #tpu.memory_space<smem>>) -> (i32, i32) {
    %c0_i32 = arith.constant 0 : i32
    %c0_i32_0 = arith.constant 0 : i32
    %c0_i32_1 = arith.constant 0 : i32
    return %c0_i32, %c0_i32_0 : i32, i32
  }
  func.func @transform_2(%arg0: i32, %arg1: memref<2xi32, #tpu.memory_space<smem>>) -> (i32, i32) {
    %c0_i32 = arith.constant 0 : i32
    %c0_i32_0 = arith.constant 0 : i32
    %c0_i32_1 = arith.constant 0 : i32
    return %c0_i32, %c0_i32_0 : i32, i32
  }
  func.func @transform_3(%arg0: i32, %arg1: memref<2xi32, #tpu.memory_space<smem>>) -> (i32, i32) {
    %c0_i32 = arith.constant 0 : i32
    %c0_i32_0 = arith.constant 0 : i32
    %c0_i32_1 = arith.constant 0 : i32
    return %c0_i32, %c0_i32_0 : i32, i32
  }
  func.func @transform_4(%arg0: i32, %arg1: memref<2xi32, #tpu.memory_space<smem>>) -> (i32, i32) {
    %c0_i32 = arith.constant 0 : i32
    %c0_i32_0 = arith.constant 0 : i32
    %c0_i32_1 = arith.constant 0 : i32
    return %c0_i32, %c0_i32_0 : i32, i32
  }
  func.func @transform_5(%arg0: i32, %arg1: memref<2xi32, #tpu.memory_space<smem>>) -> (i32, i32) {
    %c0_i32 = arith.constant 0 : i32
    %c0_i32_0 = arith.constant 0 : i32
    %c0_i32_1 = arith.constant 0 : i32
    return %c0_i32, %c0_i32_0 : i32, i32
  }
  func.func @transform_6(%arg0: i32, %arg1: memref<2xi32, #tpu.memory_space<smem>>) -> (i32, i32, i32) {
    %c0_i32 = arith.constant 0 : i32
    %c0_i32_0 = arith.constant 0 : i32
    %c0_i32_1 = arith.constant 0 : i32
    return %arg0, %c0_i32, %c0_i32_0 : i32, i32, i32
  }
  func.func @transform_7(%arg0: i32, %arg1: memref<2xi32, #tpu.memory_space<smem>>) -> (i32, i32, i32) {
    %c0_i32 = arith.constant 0 : i32
    %c0_i32_0 = arith.constant 0 : i32
    %c0_i32_1 = arith.constant 0 : i32
    return %arg0, %c0_i32, %c0_i32_0 : i32, i32, i32
  }
}

</mosaic_0001>

<bundles_post_ra>
// kernel: _network_apply.1
= control target key start
LH: loop header
LB: loop body
LE: loop exit
PB: predicated region body
PF: predicated region fallthrough
CT: control target
= control target key end

     0   :  { %s1715_s0 = inlined_call_operand.vmem [shape: s32[2], index: 0, kind: input, shape index: {}]   ;;  %s1716_s1 = inlined_call_operand.vmem [shape: bf16[2,256,128], index: 1, kind: input, shape index: {}]   ;;  %s1717_s2 = inlined_call_operand.vmem [shape: bf16[128,128], index: 2, kind: input, shape index: {}]   ;;  %s1718_s3 = inlined_call_operand.vmem [shape: f32[1,128], index: 3, kind: input, shape index: {}]   ;;  %s1719_s4 = inlined_call_operand.vmem [shape: bf16[128,128], index: 4, kind: input, shape index: {}]   ;;  %s1720_s5 = inlined_call_operand.vmem [shape: f32[1,128], index: 5, kind: input, shape index: {}]   ;;  %s1721_s6 = inlined_call_operand.vmem [shape: f32[128,128], index: 6, kind: input, shape index: {}]   ;;  %s1722_s7 = inlined_call_operand.hbm [shape: f32[2,1,128], index: 7, kind: output, shape index: {0}]   ;;  %s1723_s8 = inlined_call_operand.vmem [shape: f32[2,1,128], index: 8, kind: output, shape index: {1}]  }
   0x1   :  { %s14_s29 = sshll.u32 %s1715_s0, 4  ;;  %s15_s29 = int_to_ptr.vmem [resolvable:$true] %s14_s29 }
   0x2   :  { %s1303_s30 = scalar_lea.vmem %s15_s29, 16  ;;  %p1308_p1 = scmp.lt.s32.totalorder %s15_s29, %s15_s29 }
   0x3   :  { %p1304_p0 = scmp.ne.s32.totalorder %s15_s29, %s1303_s30  ;;  %p1309_p2 = scmp.lt.s32.totalorder %s1303_s30, %s1303_s30 }
   0x5   :  { %p1310_p3 = por %p1309_p2, %p1308_p1 }
   0x7   :  { %p1311_p4 = pnand %p1310_p3, %p1304_p0 }
   0x9   :  { %1314 = shalt.err (!%p1311_p4)  }
   0xa   :  { %s1379_s9 = smov [#allocation3]  }
   0xb   :  { %17 = dma.vmem_to_smem %s15_s29, 16, %s1379_s9, [#allocation2] }
   0xc   :  { %1357 = dma.done.wait [#allocation2], 16 }
   0xd   :  { %1358 = vsyncadd [#allocation2], 4294967280 }
   0xe   :  { %19 = sfence }
   0xf   :  { %20 = vsyncpa [#allocation5], 0 }
  0x10   :  { %22 = vsyncpa [#allocation5 + $0x1], 0  ;;  %s1431_s10 = smov 0   ;;  %s1433_s11 = smov 0  }
  0x11   :  { %s1435_s0 = smov 0   ;;  %s1437_s12 = smov 0  }
  0x12 LB: > { %s1452_s13 = sadd.s32 4294967295, %s1377_s12   ;;  %s1031_s14 = sadd.s32 4294967294, %s1377_s12   ;;  %s1377_s12 = sphi %s1437_s12, %s1729_s12   ;;  %s1373_s0 = sphi %s1435_s0, %s1728_s0   ;;  %s1369_s11 = sphi %s1433_s11, %s1727_s11   ;;  %s1365_s10 = sphi %s1431_s10, %s1726_s10  }
  0x13   : > { %s1456_s15 = sadd.s32 1, %s1377_s12   ;;  %s166_s16 = sadd.s32 1, %s1373_s0 }
  0x14   : > { %s163_s17 = ssub.s32 %s1377_s12, %s1456_s15  ;;  %p176_p5 = scmp.ne.s32.totalorder %s1373_s0, %s1369_s11 }
  0x15   : > { %p164_p6 = scmp.eq.s32.totalorder %s163_s17, 0  ;;  %p177_p7 = scmp.eq.s32.totalorder %s1452_s13, 1 }
  0x16   : > { %p182_p8 = scmp.ne.s32.totalorder %s1369_s11, %s1365_s10  ;;  %p183_p9 = scmp.eq.s32.totalorder %s1031_s14, 1 }
  0x17   : > { %s1467_s18 = scalar_select %p164_p6, %s1373_s0, %s166_s16  }
  0x18   : > { %p1469_p10 = por %p177_p7, %p176_p5  ;;  %p1473_p11 = por %p183_p9, %p182_p8 }
  0x19   : > { %p1034_p12 = scmp.ge.s32.totalorder %s1377_s12, 1  ;;  %p250_p13 = scmp.lt.s32.totalorder %s1377_s12, 3 }
  0x1b   : > { %p251_p0 = pnand %p1034_p12, %p250_p13 }
  0x1c   : > { %p284_p1 = scmp.lt.s32.totalorder (!%p251_p0), %s1452_s13, 1  ;;  %s928_s16 = sld [smem:[#allocation3 + %s1452_s13]] (!%p251_p0) }
  0x1d   : > { %254 = sbr.rel (%p251_p0) target bundleno = 910 (0x38e), region = 44  ;;  %s277_s17 = sand.u32 (!%p251_p0), 1, %s1369_s11  }
  0x1e   : > { %s939_s26 = scalar_lea.sflag (!%p251_p0), [#allocation5], %s277_s17 }
  0x22   : > { %v1269_v0 = vld [vmem:[%s1717_s2 + $0x38] sm:$0xff]   ;;  %v1270_v1 = vld [vmem:[%s1717_s2 + $0x30] sm:$0xff]   ;;  %s1487_s25 = scalar_select %p284_p1, %s1452_s13, 1  ;;  %v1271_v2 = vld [vmem:[%s1717_s2 + $0x28] sm:$0xff]   ;;  %v1380_v25 = vmov 0.0   ;;  %vm1381_vm0 = vmmov 0  }
  0x23   : > { %1124 = vmatprep.subr.bf16.mxu0 %v1269_v0  ;;  %v1272_v3 = vld [vmem:[%s1717_s2 + $0x20] sm:$0xff]   ;;  %v1273_v5 = vld [vmem:[%s1717_s2 + $0x18] sm:$0xff]   ;;  %v1274_v6 = vld [vmem:[%s1717_s2 + $0x10] sm:$0xff]   ;;  %1172 = vmatprep.subr.bf16.mxu1 %v1380_v25  ;;  %vm830_vm1 = vcmask 1040384  }
  0x24   : > { %1125 = vmatpush3.bf16.msra.mxu0 %v1269_v0  ;;  %s1073_s28 = sshll.u32 %s1487_s25, 7  ;;  %v1275_v7 = vld [vmem:[%s1717_s2 + $0x8] sm:$0xff]   ;;  %v1276_v8 = vld [vmem:[%s1717_s2] sm:$0xff]   ;;  %v1293_v24 = vld [vmem:[%s1719_s4 + $0x38] sm:$0xff]   ;;  %1188 = vmatprep.mubr.msk.bf16.mxu1 %vm1381_vm0, %v1380_v25  ;;  %s291_s14 = scalar_lea.vmem %s1723_s8, %s1487_s25 }
  0x25   : > { %1126 = vmatprep.subr.bf16.mxu0 %v1270_v1  ;;  %s1496_s9 = scalar_lea.vmem %s1716_s1, %s1073_s28  ;;  %1173 = vmatpush3.bf16.msra.mxu1 %v1293_v24  ;;  %v1294_v26 = vld [vmem:[%s1719_s4 + $0x30] sm:$0xff]   ;;  %v1295_v27 = vld [vmem:[%s1719_s4 + $0x28] sm:$0xff]   ;;  %v1296_v28 = vld [vmem:[%s1719_s4 + $0x20] sm:$0xff]   ;;  %s1070_s25 = sshll.u32 %s1452_s13, 4 }
  0x26   : > { %v1277_v4 = vld [vmem:[%s1496_s9] sm:$0xff]   ;;  %v1278_v9 = vld [vmem:[%s1496_s9 + $0x8] sm:$0xff]   ;;  %v1279_v10 = vld [vmem:[%s1496_s9 + $0x10] sm:$0xff]   ;;  %1174 = vmatprep.subr.bf16.mxu1 %v1380_v25  ;;  %s1680_s24 = scalar_lea.hbm %s1722_s7, %s1070_s25  ;;  %s1382_s28 = smov [#allocation4]  }
  0x27   : > { %1140 = vmatprep.mubr.bf16.mxu0 %v1277_v4  ;;  %v1280_v11 = vld [vmem:[%s1496_s9 + $0x18] sm:$0xff]   ;;  %v1281_v12 = vld [vmem:[%s1496_s9 + $0x20] sm:$0xff]   ;;  %v1282_v13 = vld [vmem:[%s1496_s9 + $0x28] sm:$0xff]   ;;  %s1319_s13 = sshll.u32 %s1382_s28, 4  ;;  %s1320_s13 = int_to_ptr.vmem [resolvable:$false] %s1319_s13 }
  0x28   : > { %1127 = vmatpush3.bf16.msra.mxu0 %v1270_v1  ;;  %v1283_v14 = vld [vmem:[%s1496_s9 + $0x30] sm:$0xff]   ;;  %v1284_v15 = vld [vmem:[%s1496_s9 + $0x38] sm:$0xff]   ;;  %v1285_v16 = vld [vmem:[%s1496_s9 + $0x40] sm:$0xff]   ;;  %s1321_s29 = scalar_lea.vmem %s1320_s13, 32 }
  0x29   : > { %1128 = vmatprep.subr.bf16.mxu0 %v1271_v2  ;;  %v1286_v17 = vld [vmem:[%s1496_s9 + $0x48] sm:$0xff]   ;;  %v1287_v18 = vld [vmem:[%s1496_s9 + $0x50] sm:$0xff]   ;;  %v1288_v19 = vld [vmem:[%s1496_s9 + $0x58] sm:$0xff]   ;;  %1175 = vmatpush3.bf16.msra.mxu1 %v1294_v26 }
  0x2a   : > { %v1289_v20 = vld [vmem:[%s1496_s9 + $0x60] sm:$0xff]   ;;  %v1290_v21 = vld [vmem:[%s1496_s9 + $0x68] sm:$0xff]   ;;  %v1291_v22 = vld [vmem:[%s1496_s9 + $0x70] sm:$0xff]   ;;  %1176 = vmatprep.subr.bf16.mxu1 %v1380_v25 }
  0x2b   : > { %v1292_v23 = vld [vmem:[%s1496_s9 + $0x78] sm:$0xff]   ;;  %v1298_v30 = vld [vmem:[%s1719_s4 + $0x10] sm:$0xff]   ;;  %v1299_v31 = vld [vmem:[%s1719_s4 + $0x8] sm:$0xff]   ;;  %s278_s9 = scalar_lea.vmem [#allocation4], %s277_s17 }
  0x2c   : > { %1129 = vmatpush3.bf16.msra.mxu0 %v1271_v2  ;;  %v1297_v29 = vld [vmem:[%s1719_s4 + $0x18] sm:$0xff]   ;;  %v1300_v32 = vld [vmem:[%s1719_s4] sm:$0xff]   ;;  %s954_s21 = sshll.u32 %s278_s9, 4  ;;  %s955_s21 = int_to_ptr.vmem [resolvable:$true] %s954_s21 }
  0x2d   : > { %1130 = vmatprep.subr.bf16.mxu0 %v1272_v3  ;;  %1177 = vmatpush3.bf16.msra.mxu1 %v1295_v27  ;;  %v1567_v35 = vld [vmem:[%s1718_s3] ss:$0 sm:$0xff]  ;;  %s1315_s27 = scalar_lea.vmem %s955_s21, 16  ;;  %p1322_p5 = scmp.lt.s32.totalorder %s955_s21, %s1320_s13 }
  0x2e   : > { %1178 = vmatprep.subr.bf16.mxu1 %v1380_v25  ;;  %p1316_p2 = scmp.ne.s32.totalorder %s955_s21, %s1315_s27  ;;  %p1323_p6 = scmp.lt.s32.totalorder %s1321_s29, %s1315_s27 }
  0x30   : > { %1131 = vmatpush3.bf16.msra.mxu0 %v1272_v3  ;;  %p1317_p3 = pnand %p1316_p2, %p1469_p10  ;;  %p1324_p7 = por %p1323_p6, %p1322_p5 }
  0x31   : > { %1132 = vmatprep.subr.bf16.mxu0 %v1273_v5  ;;  %1179 = vmatpush3.bf16.msra.mxu1 %v1296_v28 }
  0x32   : > { %1180 = vmatprep.subr.bf16.mxu1 %v1380_v25  ;;  %p1318_p4 = pneg %p1317_p3 }
  0x34   : > { %1133 = vmatpush3.bf16.msra.mxu0 %v1273_v5  ;;  %p1325_p8 = pnand %p1324_p7, %p1318_p4 }
  0x35   : > { %1134 = vmatprep.subr.bf16.mxu0 %v1274_v6  ;;  %1181 = vmatpush3.bf16.msra.mxu1 %v1297_v29 }
  0x36   : > { %1182 = vmatprep.subr.bf16.mxu1 %v1380_v25 }
  0x38   : > { %1135 = vmatpush3.bf16.msra.mxu0 %v1274_v6 }
  0x39   : > { %1136 = vmatprep.subr.bf16.mxu0 %v1275_v7  ;;  %1183 = vmatpush3.bf16.msra.mxu1 %v1298_v30 }
  0x3a   : > { %1184 = vmatprep.subr.bf16.mxu1 %v1380_v25 }
  0x3c   : > { %1137 = vmatpush3.bf16.msra.mxu0 %v1275_v7 }
  0x3d   : > { %1138 = vmatprep.subr.bf16.mxu0 %v1276_v8  ;;  %1185 = vmatpush3.bf16.msra.mxu1 %v1299_v31 }
  0x3e   : > { %1186 = vmatprep.subr.bf16.mxu1 %v1380_v25 }
  0x40   : > { %1139 = vmatpush3.bf16.msra.mxu0 %v1276_v8 }
  0x41   : > { %1187 = vmatpush3.bf16.msra.mxu1 %v1300_v32 }
  0x42   : > { %1192 = vmatprep.subr.mxu1 %v1380_v25 }
  0x43   : > { %1141 = vmatmul.mubr.bf16.vlgmr.msra.gmra.mxu0 %v1278_v9 }
  0x44   : > { %1144 = vmatprep.mubr.bf16.mxu0 %v1279_v10 }
  0x4b   : > { %1145 = vmatmul.mubr.bf16.gmra.mxu0 %v1280_v11 }
  0x4c   : > { %1148 = vmatprep.mubr.bf16.mxu0 %v1281_v12 }
  0x53   : > { %1149 = vmatmul.mubr.bf16.gmra.mxu0 %v1282_v13 }
  0x54   : > { %1152 = vmatprep.mubr.bf16.mxu0 %v1283_v14 }
  0x5b   : > { %1153 = vmatmul.mubr.bf16.gmra.mxu0 %v1284_v15 }
  0x5c   : > { %1156 = vmatprep.mubr.bf16.mxu0 %v1285_v16 }
  0x63   : > { %1157 = vmatmul.mubr.bf16.gmra.mxu0 %v1286_v17 }
  0x64   : > { %1160 = vmatprep.mubr.bf16.mxu0 %v1287_v18 }
  0x6b   : > { %1161 = vmatmul.mubr.bf16.gmra.mxu0 %v1288_v19 }
  0x6c   : > { %1164 = vmatprep.mubr.bf16.mxu0 %v1289_v20 }
  0x73   : > { %1165 = vmatmul.mubr.bf16.gmra.mxu0 %v1290_v21 }
  0x74   : > { %1168 = vmatprep.mubr.bf16.mxu0 %v1291_v22 }
  0x7b   : > { %1169 = vmatmul.mubr.bf16.gmra.mxu0 %v1292_v23 }
 0x103   : > { %v1142_v33 = vpop.f32.mrf.mxu0 }
 0x104   : > { %v535_v39 = vadd.f32 %v1142_v33, %v1567_v35 }
 0x105   : > { %v526_v34 = vpop.f32.mrf.mxu0 }
 0x106   : > { %v527_v37 = vadd.f32 %v1567_v35, %v526_v34  ;;  %v655_v46 = vmax.f32 %v535_v39, 0.0 }
 0x107   : > { %v1143_v36 = vpop.f32.mrf.mxu0 }
 0x108   : > { %v653_v42 = vmax.f32 %v527_v37, 0.0  ;;  %v538_v43 = vadd.f32 %v1143_v36, %v1567_v35 }
 0x109   : > { %v529_v38 = vpop.f32.mrf.mxu0 }
 0x10a   : > { %v530_v40 = vadd.f32 %v1567_v35, %v529_v38  ;;  %v656_v50 = vmax.f32 %v538_v43, 0.0 }
 0x10b   : > { %v1146_v41 = vpop.f32.mrf.mxu0 }
 0x10c   : > { %v654_v44 = vmax.f32 %v530_v40, 0.0  ;;  %v551_v53 = vadd.f32 %v1146_v41, %v1567_v35 }
 0x10d   : > { %v542_v45 = vpop.f32.mrf.mxu0 }
 0x10e   : > { %v685_v47 = vadd.f32 %v654_v44, %v653_v42  ;;  %v543_v48 = vadd.f32 %v1567_v35, %v542_v45  ;;  %v659_v62 = vmax.f32 %v551_v53, 0.0 }
 0x10f   : > { %v1147_v49 = vpop.f32.mrf.mxu0 }
 0x110   : > { %v686_v51 = vadd.f32 %v685_v47, %v655_v46  ;;  %v657_v54 = vmax.f32 %v543_v48, 0.0  ;;  %v554_v59 = vadd.f32 %v1147_v49, %v1567_v35 }
 0x111   : > { %v545_v52 = vpop.f32.mrf.mxu0 }
 0x112   : > { %v687_v55 = vadd.f32 %v686_v51, %v656_v50  ;;  %v546_v56 = vadd.f32 %v1567_v35, %v545_v52  ;;  %v660_v2 = vmax.f32 %v554_v59, 0.0 }
 0x113   : > { %v1150_v57 = vpop.f32.mrf.mxu0 }
 0x114   : > { %v688_v58 = vadd.f32 %v687_v55, %v657_v54  ;;  %v658_v60 = vmax.f32 %v546_v56, 0.0  ;;  %v567_v5 = vadd.f32 %v1150_v57, %v1567_v35 }
 0x115   : > { %v558_v61 = vpop.f32.mrf.mxu0 }
 0x116   : > { %v689_v63 = vadd.f32 %v688_v58, %v658_v60  ;;  %v559_v0 = vadd.f32 %v1567_v35, %v558_v61  ;;  %v663_v14 = vmax.f32 %v567_v5, 0.0 }
 0x117   : > { %v1151_v1 = vpop.f32.mrf.mxu0 }
 0x118   : > { %v690_v3 = vadd.f32 %v689_v63, %v659_v62  ;;  %v661_v6 = vmax.f32 %v559_v0, 0.0  ;;  %v570_v11 = vadd.f32 %v1151_v1, %v1567_v35 }
 0x119   : > { %v561_v4 = vpop.f32.mrf.mxu0 }
 0x11a   : > { %v691_v7 = vadd.f32 %v690_v3, %v660_v2  ;;  %v562_v8 = vadd.f32 %v1567_v35, %v561_v4  ;;  %v664_v18 = vmax.f32 %v570_v11, 0.0 }
 0x11b   : > { %v1154_v9 = vpop.f32.mrf.mxu0 }
 0x11c   : > { %v692_v10 = vadd.f32 %v691_v7, %v661_v6  ;;  %v662_v12 = vmax.f32 %v562_v8, 0.0  ;;  %v583_v21 = vadd.f32 %v1154_v9, %v1567_v35 }
 0x11d   : > { %v574_v13 = vpop.f32.mrf.mxu0 }
 0x11e   : > { %v693_v15 = vadd.f32 %v692_v10, %v662_v12  ;;  %v575_v16 = vadd.f32 %v1567_v35, %v574_v13  ;;  %v667_v31 = vmax.f32 %v583_v21, 0.0 }
 0x11f   : > { %v1155_v17 = vpop.f32.mrf.mxu0 }
 0x120   : > { %v694_v19 = vadd.f32 %v693_v15, %v663_v14  ;;  %v665_v22 = vmax.f32 %v575_v16, 0.0  ;;  %v586_v28 = vadd.f32 %v1155_v17, %v1567_v35 }
 0x121   : > { %v577_v20 = vpop.f32.mrf.mxu0 }
 0x122   : > { %v695_v23 = vadd.f32 %v694_v19, %v664_v18  ;;  %v578_v24 = vadd.f32 %v1567_v35, %v577_v20  ;;  %v668_v36 = vmax.f32 %v586_v28, 0.0 }
 0x123   : > { %v1158_v26 = vpop.f32.mrf.mxu0 }
 0x124   : > { %v696_v27 = vadd.f32 %v695_v23, %v665_v22  ;;  %v666_v29 = vmax.f32 %v578_v24, 0.0  ;;  %v599_v39 = vadd.f32 %v1158_v26, %v1567_v35 }
 0x125   : > { %v590_v30 = vpop.f32.mrf.mxu0 }
 0x126   : > { %v697_v32 = vadd.f32 %v696_v27, %v666_v29  ;;  %v591_v33 = vadd.f32 %v1567_v35, %v590_v30  ;;  %v671_v48 = vmax.f32 %v599_v39, 0.0 }
 0x127   : > { %v1159_v34 = vpop.f32.mrf.mxu0 }
 0x128   : > { %v698_v37 = vadd.f32 %v697_v32, %v667_v31  ;;  %v669_v40 = vmax.f32 %v591_v33, 0.0  ;;  %v602_v45 = vadd.f32 %v1159_v34, %v1567_v35 }
 0x129   : > { %v593_v38 = vpop.f32.mrf.mxu0 }
 0x12a   : > { %v699_v41 = vadd.f32 %v698_v37, %v668_v36  ;;  %v594_v42 = vadd.f32 %v1567_v35, %v593_v38  ;;  %v672_v52 = vmax.f32 %v602_v45, 0.0  ;;  %v851_v45 = vld [vmem:[%s1721_s6 + $0x70] sm:$0xff] }
 0x12b   : > { %v1162_v43 = vpop.f32.mrf.mxu0 }
 0x12c   : > { %v700_v44 = vadd.f32 %v699_v41, %v669_v40  ;;  %v670_v46 = vmax.f32 %v594_v42, 0.0  ;;  %v615_v55 = vadd.f32 %v1162_v43, %v1567_v35 }
 0x12d   : > { %v606_v47 = vpop.f32.mrf.mxu0 }
 0x12e   : > { %v701_v49 = vadd.f32 %v700_v44, %v670_v46  ;;  %v607_v50 = vadd.f32 %v1567_v35, %v606_v47  ;;  %v675_v0 = vmax.f32 %v615_v55, 0.0  ;;  %v850_v46 = vld [vmem:[%s1721_s6 + $0x68] sm:$0xff]  ;;  %v849_v47 = vld [vmem:[%s1721_s6 + $0x60] sm:$0xff] }
 0x12f   : > { %v1163_v51 = vpop.f32.mrf.mxu0 }
 0x130   : > { %v702_v53 = vadd.f32 %v701_v49, %v671_v48  ;;  %v673_v56 = vmax.f32 %v607_v50, 0.0  ;;  %v618_v61 = vadd.f32 %v1163_v51, %v1567_v35  ;;  %v848_v48 = vld [vmem:[%s1721_s6 + $0x58] sm:$0xff]  ;;  %v847_v49 = vld [vmem:[%s1721_s6 + $0x50] sm:$0xff]  ;;  %v740_v50 = vld [vmem:[%s1720_s5] sm:$0x1] }
 0x131   : > { %v609_v54 = vpop.f32.mrf.mxu0 }
 0x132   : > { %v703_v57 = vadd.f32 %v702_v53, %v672_v52  ;;  %v610_v58 = vadd.f32 %v1567_v35, %v609_v54  ;;  %v676_v4 = vmax.f32 %v618_v61, 0.0  ;;  %v843_v61 = vld [vmem:[%s1721_s6 + $0x30] sm:$0xff] }
 0x133   : > { %v1166_v59 = vpop.f32.mrf.mxu0 }
 0x134   : > { %v704_v60 = vadd.f32 %v703_v57, %v673_v56  ;;  %v674_v62 = vmax.f32 %v610_v58, 0.0  ;;  %v631_v7 = vadd.f32 %v1166_v59, %v1567_v35  ;;  %v846_v58 = vld [vmem:[%s1721_s6 + $0x48] sm:$0xff]  ;;  %v845_v59 = vld [vmem:[%s1721_s6 + $0x40] sm:$0xff] }
 0x135   : > { %v622_v63 = vpop.f32.mrf.mxu0 }
 0x136   : > { %v705_v1 = vadd.f32 %v704_v60, %v674_v62  ;;  %v623_v2 = vadd.f32 %v1567_v35, %v622_v63  ;;  %v679_v16 = vmax.f32 %v631_v7, 0.0  ;;  %v844_v60 = vld [vmem:[%s1721_s6 + $0x38] sm:$0xff]  ;;  %v842_v62 = vld [vmem:[%s1721_s6 + $0x28] sm:$0xff]  ;;  %v841_v63 = vld [vmem:[%s1721_s6 + $0x20] sm:$0xff] }
 0x137   : > { %v1167_v3 = vpop.f32.mrf.mxu0 }
 0x138   : > { %v706_v5 = vadd.f32 %v705_v1, %v675_v0  ;;  %v677_v8 = vmax.f32 %v623_v2, 0.0  ;;  %v634_v13 = vadd.f32 %v1167_v3, %v1567_v35  ;;  %v840_v0 = vld [vmem:[%s1721_s6 + $0x18] sm:$0xff]  ;;  %v839_v1 = vld [vmem:[%s1721_s6 + $0x10] sm:$0xff]  ;;  %v838_v2 = vld [vmem:[%s1721_s6 + $0x8] sm:$0xff] }
 0x139   : > { %v625_v6 = vpop.f32.mrf.mxu0  ;;  %v837_v3 = vld [vmem:[%s1721_s6] sm:$0xff] }
 0x13a   : > { %v707_v9 = vadd.f32 %v706_v5, %v676_v4  ;;  %v626_v10 = vadd.f32 %v1567_v35, %v625_v6  ;;  %v680_v20 = vmax.f32 %v634_v13, 0.0 }
 0x13b   : > { %v1170_v11 = vpop.f32.mrf.mxu0 }
 0x13c   : > { %v708_v12 = vadd.f32 %v707_v9, %v677_v8  ;;  %v678_v14 = vmax.f32 %v626_v10, 0.0  ;;  %v647_v23 = vadd.f32 %v1170_v11, %v1567_v35  ;;  %v923_v8 = vlaneseq }
 0x13d   : > { %v638_v15 = vpop.f32.mrf.mxu0  ;;  %v929_v11 = vstv %s928_s16 }
 0x13e   : > { %v709_v17 = vadd.f32 %v708_v12, %v678_v14  ;;  %v639_v18 = vadd.f32 %v1567_v35, %v638_v15  ;;  %v683_v31 = vmax.f32 %v647_v23, 0.0  ;;  %v924_v9 = vshrl.u32 %v923_v8, 7 }
 0x13f   : > { %v1171_v19 = vpop.f32.mrf.mxu0  ;;  %v926_v10 = vand.u32 127, %v923_v8 }
 0x140   : > { %v710_v21 = vadd.f32 %v709_v17, %v679_v16  ;;  %v681_v24 = vmax.f32 %v639_v18, 0.0  ;;  %v650_v29 = vadd.f32 %v1171_v19, %v1567_v35  ;;  %vm927_vm2 = vcmp.eq.s32.totalorder %v924_v9, 0 }
 0x141   : > { %v641_v22 = vpop.f32.mrf.mxu0  ;;  %vm930_vm3 = vcmp.eq.s32.totalorder %v926_v10, %v929_v11 }
 0x142   : > { %v711_v26 = vadd.f32 %v710_v21, %v680_v20  ;;  %v642_v27 = vadd.f32 %v1567_v35, %v641_v22  ;;  %v684_v33 = vmax.f32 %v650_v29, 0.0  ;;  %v852_v35 = vld [vmem:[%s1721_s6 + $0x78] sm:$0xff]  ;;  %vm931_vm4 = vmand %vm927_vm2, %vm930_vm3 }
 0x143   : > { %v932_v12 = vsel %vm931_vm4, 1.0, %v1380_v25 }
 0x144   : > { %v712_v28 = vadd.f32 %v711_v26, %v681_v24  ;;  %v682_v30 = vmax.f32 %v642_v27, 0.0  ;;  %v934_v13 = vmul.f32 10.5, %v932_v12 }
 0x146   : > { %v713_v32 = vadd.f32 %v712_v28, %v682_v30 }
 0x148   : > { %v714_v34 = vadd.f32 %v713_v32, %v683_v31 }
 0x14a   : > { %v715_v36 = vadd.f32 %v714_v34, %v684_v33 }
 0x14c   : > { %v716_v37 = vrot.slane %v715_v36, 4 }
 0x14e   : > { %v717_v38 = vadd.f32 %v716_v37, %v715_v36 }
 0x150   : > { %v718_v39 = vrot.slane %v717_v38, 2 }
 0x152   : > { %v719_v40 = vadd.f32 %v718_v39, %v717_v38 }
 0x154   : > { %v720_v41 = vrot.slane %v719_v40, 1 }
 0x156   : > { %v721_v42 = vadd.f32 %v720_v41, %v719_v40 }
 0x158   : > { %v722_v43 = vmul.f32 0.00390625, %v721_v42 }
 0x15a   : > { %v723_v44 = vpack.c.bf16 %v722_v43, %v722_v43 }
 0x15c   : > { %1189 = vmatmul.mubr.bf16.vlgmr.msra.gmra.mxu1 %v723_v44 }
 0x15d   : > { %1224 = vmatprep.mubr.msk.f32.mxu1 %vm1381_vm0, %v1380_v25  ;;  %1193 = vmatpush3.msra.mxu1 %v852_v35 }
 0x15e   : > { %1194 = vmatprep.subr.mxu1 %v1380_v25 }
 0x15f   : > { %1195 = vmatpush3.msra.mxu1 %v851_v45 }
 0x160   : > { %1196 = vmatprep.subr.mxu1 %v1380_v25 }
 0x161   : > { %1197 = vmatpush3.msra.mxu1 %v850_v46 }
 0x162   : > { %1198 = vmatprep.subr.mxu1 %v1380_v25 }
 0x163   : > { %1199 = vmatpush3.msra.mxu1 %v849_v47 }
 0x164   : > { %1200 = vmatprep.subr.mxu1 %v1380_v25 }
 0x165   : > { %1201 = vmatpush3.msra.mxu1 %v848_v48 }
 0x166   : > { %1202 = vmatprep.subr.mxu1 %v1380_v25 }
 0x167   : > { %1203 = vmatpush3.msra.mxu1 %v847_v49 }
 0x168   : > { %1204 = vmatprep.subr.mxu1 %v1380_v25 }
 0x169   : > { %1205 = vmatpush3.msra.mxu1 %v846_v58 }
 0x16a   : > { %1206 = vmatprep.subr.mxu1 %v1380_v25 }
 0x16b   : > { %1207 = vmatpush3.msra.mxu1 %v845_v59 }
 0x16c   : > { %1208 = vmatprep.subr.mxu1 %v1380_v25 }
 0x16d   : > { %1209 = vmatpush3.msra.mxu1 %v844_v60 }
 0x16e   : > { %1210 = vmatprep.subr.mxu1 %v1380_v25 }
 0x16f   : > { %1211 = vmatpush3.msra.mxu1 %v843_v61 }
 0x170   : > { %1212 = vmatprep.subr.mxu1 %v1380_v25 }
 0x171   : > { %1213 = vmatpush3.msra.mxu1 %v842_v62 }
 0x172   : > { %1214 = vmatprep.subr.mxu1 %v1380_v25 }
 0x173   : > { %1215 = vmatpush3.msra.mxu1 %v841_v63 }
 0x174   : > { %1216 = vmatprep.subr.mxu1 %v1380_v25 }
 0x175   : > { %1217 = vmatpush3.msra.mxu1 %v840_v0 }
 0x176   : > { %1218 = vmatprep.subr.mxu1 %v1380_v25 }
 0x177   : > { %1219 = vmatpush3.msra.mxu1 %v839_v1 }
 0x178   : > { %1220 = vmatprep.subr.mxu1 %v1380_v25 }
 0x179   : > { %1221 = vmatpush3.msra.mxu1 %v838_v2 }
 0x17a   : > { %1222 = vmatprep.subr.mxu1 %v1380_v25 }
 0x17b   : > { %1223 = vmatpush3.msra.mxu1 %v837_v3 }
 0x21c   : > { %v823_v51 = vpop.f32.mrf.mxu1 }
 0x21d   : > { %v824_v52 = vadd.f32 %v823_v51, %v740_v50 }
 0x21e   : > { %v1190_v53 = vpop.f32.mrf.mxu1 }
 0x21f   : > { %v829_v54 = vmul.f32 %v824_v52, %v824_v52 }
 0x220   : > { %v826_v55 = vpop.f32.mrf.mxu1 }
 0x221   : > { %v831_v56 = vsel %vm830_vm1, %v829_v54, 0.0 }
 0x222   : > { %v1191_v57 = vpop.f32.mrf.mxu1  ;;  %832 = vadd.xlane.f32.xlu0 %v831_v56 }
 0x2ab   : > { %v833_v4 = vpop.xlane.xlu0 %832 }
 0x2ac   : > { %v834_v5 = vadd.f32 1e-12, %v833_v4  ;;  %937 = vst [vmem:[%s291_s14] sm:$0x1] %v833_v4 }
 0x2ae   : > { %1301 = vrsqrt.f32 %v834_v5 }
 0x2bb   : > { %v1302_v6 = vpop.eup %1301 }
 0x2bc   : > { %v836_v7 = vmul.f32 %v1302_v6, %v824_v52 }
 0x2be   : > { %1225 = vmatmul.mubr.f32.vlgmr.msra.gmra.mxu1 %v836_v7 }
 0x37e   : > { %v919_v14 = vpop.f32.mrf.mxu1 }
 0x37f   : > { %v935_v15 = vsub.f32 %v919_v14, %v934_v13 }
 0x380   : > { %v1226_v16 = vpop.f32.mrf.mxu1 }
 0x381   : > { %936 = vst [vmem:[%s278_s9] sm:$0x1] %v935_v15 }
 0x382   : > { %1328 = shalt.err (!%p1325_p8)
}
 0x383   : > { %s1329_s30 = scalar_lea.hbm %s1680_s24, 16  ;;  %s1333_s17 = scalar_lea.hbm %s1722_s7, 32 }
 0x384   : > { %p1330_p9 = scmp.ne.s32.totalorder %s1680_s24, %s1329_s30  ;;  %p1334_p0 = scmp.lt.s32.totalorder %s1680_s24, %s1722_s7 }
 0x385   : > { %p1335_p1 = scmp.lt.s32.totalorder %s1333_s17, %s1329_s30 }
 0x386   : > { %p1331_p12 = pnand %p1330_p9, %p1469_p10 }
 0x387   : > { %p1336_p2 = por %p1335_p1, %p1334_p0 }
 0x388   : > { %p1332_p13 = pneg %p1331_p12 }
 0x38a   : > { %p1337_p3 = pnand %p1336_p2, %p1332_p13 }
 0x38c   : > { %1340 = shalt.err (!%p1337_p3)
}
 0x38d   : > { %1227 = dma.vmem_to_hbm [thread:$0]  (%p1469_p10), %s955_s21, 16, %s1680_s24, %s939_s26  }
 0x38e PF: > { %p1233_p4 = scmp.ge.s32.totalorder %s1377_s12, 2  ;;  %s969_s22 = sand.u32 1, %s1365_s10  }
 0x38f   : > { %s970_s23 = scalar_lea.sflag [#allocation5], %s969_s22 }
 0x390   : > { %p1230_p5 = pnand %p1233_p4, %p1473_p11 }
 0x392   : > { %p1231_p6 = pneg %p1230_p5 }
 0x394   : > { %1360 = dma.done.wait (%p1231_p6), %s970_s23, 16  }
 0x395   : > { %1362 = vsyncadd (%p1231_p6), %s970_s23, 4294967280  ;;  %p25_p7 = scmp.ge.s32.totalorder %s1456_s15, 4   ;;  %s1726_s10 = smov %s1369_s11 }
 0x396   : > { %s1727_s11 = smov %s1373_s0  ;;  %s1728_s0 = smov %s1467_s18 }
 0x397   : > { %s1729_s12 = smov %s1456_s15  ;;  %27 = sbr.rel (!%p25_p7) target bundleno = 18 (0x12), region = 91 }
 0x39c   :  { %980 = vsyncpa [#allocation5], 1 }
 0x39d   :  { %982 = vsyncpa [#allocation5 + $0x1], 1 }

</bundles_post_ra>
